<compile_context>
chip_gen: v7x
topology: tpu7x:2x2x1
jax: 0.10.0
libtpu: 0.0.40
codegen_flags: <defaults>
</compile_context>

<pallas_src>
import functools
import math

import jax
import jax.numpy as jnp
from jax import lax
from jax.experimental import pallas as pl
from jax.experimental.pallas import tpu as pltpu


def _pick_tile(n, d, target=None, vmem_budget_bytes=12 << 20):
    """Largest square logits tile that divides n, is a multiple of 8 (or == n),
    and keeps the loss kernel's working set inside a conservative VMEM budget
    (budget sized for v5e's 16 MiB default scoped VMEM)."""
    if target is None:
        target = 512
    if n <= 8 or (n <= target and n % 8 != 0):
        return n

    def est_bytes(t):
        # double-buffered f32 (t, d) inputs x2  +  ~3 f32 (t, t) temporaries
        # +  column-state scratch (2 * (n // t) * t f32).
        return 16 * t * d + 12 * t * t + 8 * n

    cap = (min(n, target) // 8) * 8
    for t in range(cap, 7, -8):
        if n % t == 0 and est_bytes(t) <= vmem_budget_bytes:
            return t
    return n  # no divisible multiple-of-8 tile found: single full-size block


# --------------------------------------------------------------------------
# Kernel 1: l2-normalize rows; fold logit_scale into the image operand.
# --------------------------------------------------------------------------
def _normalize_scale_kernel(img_ref, txt_ref, scale_ref, img_out_ref, txt_out_ref):
    eps2 = jnp.float32(1e-24)  # (1e-12)^2 : max(||x||, eps) == sqrt(max(||x||^2, eps^2))
    scale = scale_ref[0, 0]

    img = img_ref[...].astype(jnp.float32)
    txt = txt_ref[...].astype(jnp.float32)

    img_inv = lax.rsqrt(jnp.maximum(jnp.sum(img * img, axis=1, keepdims=True), eps2))
    txt_inv = lax.rsqrt(jnp.maximum(jnp.sum(txt * txt, axis=1, keepdims=True), eps2))

    # scale folded here (N*D multiplies total, never N*N)
    img_out_ref[...] = (img * (img_inv * scale)).astype(img_out_ref.dtype)
    txt_out_ref[...] = (txt * txt_inv).astype(txt_out_ref.dtype)


# --------------------------------------------------------------------------
# Kernel 2: tiled symmetric cross-entropy with online logsumexp.
#   img_ref : (t, D) rows  = logit_scale * l2norm(image)[i-block]
#   txt_ref : (t, D) rows  = l2norm(text)[j-block]   (square tiles)
# --------------------------------------------------------------------------
def _clip_loss_kernel(img_ref, txt_ref, loss_ref,
                      m_row, l_row, m_col, l_col, acc_ref, *, inv_two_n):
    i = pl.program_id(0)
    j = pl.program_id(1)
    ni = pl.num_programs(0)
    nj = pl.num_programs(1)

    @pl.when((i == 0) & (j == 0))
    def _init_acc():
        acc_ref[...] = jnp.zeros_like(acc_ref)

    @pl.when(j == 0)
    def _init_rows():
        m_row[...] = jnp.full_like(m_row, -jnp.inf)
        l_row[...] = jnp.zeros_like(l_row)

    @pl.when(i == 0)
    def _init_cols():
        m_col[j] = jnp.full(m_col.shape[1:], -jnp.inf, dtype=m_col.dtype)
        l_col[j] = jnp.zeros(l_col.shape[1:], dtype=l_col.dtype)

    a = img_ref[...]   # (t, D), already scaled + normalized
    b = txt_ref[...]   # (t, D), normalized

    # Logits tile on the MXU, contracting the feature dim of both operands
    # directly (no explicit transpose of txt).
    s = lax.dot_general(a, b, dimension_numbers=(((1,), (1,)), ((), ())),
                        preferred_element_type=jnp.float32)      # (t, t)

    # --- online logsumexp over rows (CE(logits_per_image)), reduction axis j ---
    m_r_new = jnp.maximum(m_row[...], jnp.max(s, axis=1, keepdims=True))   # (t, 1)
    l_row[...] = l_row[...] * jnp.exp(m_row[...] - m_r_new) + \
        jnp.sum(jnp.exp(s - m_r_new), axis=1, keepdims=True)
    m_row[...] = m_r_new

    # --- online logsumexp over cols (CE(logits_per_text)), reduction axis i ---
    m_c = m_col[j]                                                          # (1, t)
    l_c = l_col[j]
    m_c_new = jnp.maximum(m_c, jnp.max(s, axis=0, keepdims=True))
    l_col[j] = l_c * jnp.exp(m_c - m_c_new) + \
        jnp.sum(jnp.exp(s - m_c_new), axis=0, keepdims=True)
    m_col[j] = m_c_new

    # --- diagonal (target) logits: rows of block i == cols of block j when i == j ---
    @pl.when(i == j)
    def _diag():
        prod = a.astype(jnp.float32) * b.astype(jnp.float32)                # (t, D)
        diag_sum = jnp.sum(jnp.sum(prod, axis=1, keepdims=True),
                           axis=0, keepdims=True)                           # (1, 1)
        acc_ref[...] += jnp.float32(-2.0) * diag_sum

    # --- finalize the rows of block i once the last column block is seen ---
    @pl.when(j == nj - 1)
    def _fin_rows():
        lse_rows = m_row[...] + jnp.log(l_row[...])                         # (t, 1)
        acc_ref[...] += jnp.sum(lse_rows, axis=0, keepdims=True)

    # --- finalize the cols of block j once the last row block is seen ---
    @pl.when(i == ni - 1)
    def _fin_cols():
        lse_cols = m_col[j] + jnp.log(l_col[j])                             # (1, t)
        acc_ref[...] += jnp.sum(lse_cols, axis=1, keepdims=True)

    # --- write scalar loss on the very last grid step ---
    @pl.when((i == ni - 1) & (j == nj - 1))
    def _write():
        loss_ref[...] = acc_ref[...] * inv_two_n


def clip_loss(image_features, text_features, logit_scale, *, row_tile=None):
    """JAX/Pallas equivalent of ClipLoss.forward (world_size=1).

    Returns (total_loss, logit_scale)."""
    img = jnp.asarray(image_features)
    txt = jnp.asarray(text_features)
    assert img.ndim == 2 and img.shape == txt.shape
    n, d = img.shape
    scale = jnp.reshape(jnp.asarray(logit_scale, dtype=jnp.float32), (1, 1))

    tb = _pick_tile(n, d, target=row_tile)
    gi = n // tb

    # ---- pass 1: normalize (rsqrt) + fold scale into the image operand ----
    img_n, txt_n = pl.pallas_call(
        _normalize_scale_kernel,
        out_shape=(jax.ShapeDtypeStruct((n, d), img.dtype),
                   jax.ShapeDtypeStruct((n, d), txt.dtype)),
        grid=(gi,),
        in_specs=[
            pl.BlockSpec((tb, d), lambda r: (r, 0)),
            pl.BlockSpec((tb, d), lambda r: (r, 0)),
            pl.BlockSpec((1, 1), lambda r: (0, 0),
                         memory_space=pltpu.MemorySpace.SMEM),
        ],
        out_specs=[
            pl.BlockSpec((tb, d), lambda r: (r, 0)),
            pl.BlockSpec((tb, d), lambda r: (r, 0)),
        ],
        compiler_params=pltpu.CompilerParams(dimension_semantics=("parallel",)),
    )(img, txt, scale)

    # ---- pass 2: tiled symmetric CE with online logsumexp ----
    tm = tb  # square logits tiles so every diagonal entry lands on block (i, i)
    kernel = functools.partial(_clip_loss_kernel, inv_two_n=float(1.0 / (2.0 * n)))
    loss = pl.pallas_call(
        kernel,
        out_shape=jax.ShapeDtypeStruct((1, 1), jnp.float32),
        grid=(gi, gi),
        in_specs=[
            pl.BlockSpec((tm, d), lambda i, j: (i, 0)),   # image rows (i-block, resident over j)
            pl.BlockSpec((tm, d), lambda i, j: (j, 0)),   # text rows  (j-block == logits cols)
        ],
        out_specs=pl.BlockSpec((1, 1), lambda i, j: (0, 0)),
        scratch_shapes=[
            pltpu.VMEM((tm, 1), jnp.float32),       # m_row (running row max)
            pltpu.VMEM((tm, 1), jnp.float32),       # l_row (running row sum-exp)
            pltpu.VMEM((gi, 1, tm), jnp.float32),   # m_col (running col max, per col block)
            pltpu.VMEM((gi, 1, tm), jnp.float32),   # l_col (running col sum-exp)
            pltpu.VMEM((1, 1), jnp.float32),        # scalar loss accumulator
        ],
        compiler_params=pltpu.CompilerParams(
            # Both grid axes carry online-logsumexp state in scratch, so they
            # must run sequentially on one core (cannot be "parallel").
            dimension_semantics=("arbitrary", "arbitrary"),
        ),
    )(img_n, txt_n)

    return loss[0, 0], logit_scale


def _reference_clip_loss(image_features, text_features, logit_scale):
    # Pure-JAX reference matching the PyTorch module.
    def l2n(x):
        return x / jnp.maximum(jnp.linalg.norm(x, axis=1, keepdims=True), 1e-12)

    img = l2n(image_features.astype(jnp.float32))
    txt = l2n(text_features.astype(jnp.float32))
    logits_i = logit_scale * img @ txt.T
    logits_t = logit_scale * txt @ img.T
    labels = jnp.arange(img.shape[0])

    def ce(logits):
        lse = jax.nn.logsumexp(logits, axis=1)
        tgt = logits[jnp.arange(logits.shape[0]), labels]
        return jnp.mean(lse - tgt)

    return 0.5 * (ce(logits_i) + ce(logits_t))


if __name__ == "__main__":
    key = jax.random.PRNGKey(0)
    k_img, k_txt, k_img2, k_txt2 = jax.random.split(key, 4)

    # Small demo shape: batch of 8 image/text pairs, 128-dim (lane-dense) embeddings.
    N, D = 8, 128
    image_features = jax.random.normal(k_img, (N, D), dtype=jnp.float32)
    text_features = jax.random.normal(k_txt, (N, D), dtype=jnp.float32)
    logit_scale = jnp.float32(math.exp(math.log(1.0 / 0.07)))

    loss, scale_out = clip_loss(image_features, text_features, logit_scale)
    loss = jax.block_until_ready(loss)
    ref = _reference_clip_loss(image_features, text_features, logit_scale)
    assert jnp.allclose(loss, ref, rtol=1e-4, atol=1e-4), (loss, ref)
    assert jnp.allclose(scale_out, logit_scale)

    # Exercise the multi-block (tiled, online-logsumexp) path: 4 x 4 grid of 64x64 tiles.
    N2, D2 = 256, 128
    img2 = jax.random.normal(k_img2, (N2, D2), dtype=jnp.float32)
    txt2 = jax.random.normal(k_txt2, (N2, D2), dtype=jnp.float32)
    loss2, _ = clip_loss(img2, txt2, logit_scale, row_tile=64)
    loss2 = jax.block_until_ready(loss2)
    ref2 = _reference_clip_loss(img2, txt2, logit_scale)
    assert jnp.allclose(loss2, ref2, rtol=1e-4, atol=1e-4), (loss2, ref2)

    # Auto tile selection path (single 256x256 block fits the VMEM budget).
    loss3, _ = clip_loss(img2, txt2, logit_scale)
    loss3 = jax.block_until_ready(loss3)
    assert jnp.allclose(loss3, ref2, rtol=1e-4, atol=1e-4), (loss3, ref2)

    print("KERNEL_OK")
</pallas_src>

<mosaic_0001>
module attributes {stable_mosaic.version = 11 : i64} {
  func.func @_normalize_scale_kernel(%arg0: i32, %arg1: memref<8x128xf32, #tpu.memory_space<vmem>>, %arg2: memref<8x128xf32, #tpu.memory_space<vmem>>, %arg3: memref<1x1xf32, #tpu.memory_space<smem>>, %arg4: memref<8x128xf32, #tpu.memory_space<vmem>>, %arg5: memref<8x128xf32, #tpu.memory_space<vmem>>) attributes {dimension_semantics = [#tpu.dimension_semantics<parallel>], iteration_bounds = array<i64: 1>, scalar_prefetch = 0 : i64, scratch_operands = 0 : i64, tpu.core_type = #tpu.core_type<tc>, window_params = [{transform_indices = @transform_0, window_bounds = array<i64: 8, 128>}, {transform_indices = @transform_1, window_bounds = array<i64: 8, 128>}, {transform_indices = @transform_2, window_bounds = array<i64: 1, 1>}, {transform_indices = @transform_3, window_bounds = array<i64: 8, 128>}, {transform_indices = @transform_4, window_bounds = array<i64: 8, 128>}]} {
    %c0 = arith.constant 0 : index
    %c0_0 = arith.constant 0 : index
    %0 = memref.load %arg3[%c0, %c0_0] : memref<1x1xf32, #tpu.memory_space<smem>>
    %c0_1 = arith.constant 0 : index
    %c0_2 = arith.constant 0 : index
    %1 = vector.load %arg1[%c0_1, %c0_2] : memref<8x128xf32, #tpu.memory_space<vmem>>, vector<8x128xf32>
    %c0_3 = arith.constant 0 : index
    %c0_4 = arith.constant 0 : index
    %2 = vector.load %arg2[%c0_3, %c0_4] : memref<8x128xf32, #tpu.memory_space<vmem>>, vector<8x128xf32>
    %3 = arith.mulf %1, %1 : vector<8x128xf32>
    %cst = arith.constant dense<0.000000e+00> : vector<8xf32>
    %4 = vector.multi_reduction <add>, %3, %cst [1] : vector<8x128xf32> to vector<8xf32>
    %5 = vector.shape_cast %4 : vector<8xf32> to vector<8x1xf32>
    %cst_5 = arith.constant 1.000000e-24 : f32
    %6 = vector.broadcast %cst_5 : f32 to vector<8x1xf32>
    %7 = arith.maximumf %5, %6 : vector<8x1xf32>
    %8 = math.rsqrt %7 : vector<8x1xf32>
    %9 = arith.mulf %2, %2 : vector<8x128xf32>
    %cst_6 = arith.constant dense<0.000000e+00> : vector<8xf32>
    %10 = vector.multi_reduction <add>, %9, %cst_6 [1] : vector<8x128xf32> to vector<8xf32>
    %11 = vector.shape_cast %10 : vector<8xf32> to vector<8x1xf32>
    %cst_7 = arith.constant 1.000000e-24 : f32
    %12 = vector.broadcast %cst_7 : f32 to vector<8x1xf32>
    %13 = arith.maximumf %11, %12 : vector<8x1xf32>
    %14 = math.rsqrt %13 : vector<8x1xf32>
    %15 = vector.broadcast %0 : f32 to vector<8x1xf32>
    %16 = arith.mulf %8, %15 : vector<8x1xf32>
    %17 = vector.broadcast %16 : vector<8x1xf32> to vector<8x128xf32>
    %18 = arith.mulf %1, %17 : vector<8x128xf32>
    %c0_8 = arith.constant 0 : index
    %c0_9 = arith.constant 0 : index
    %19 = vector.load %arg4[%c0_8, %c0_9] : memref<8x128xf32, #tpu.memory_space<vmem>>, vector<8x128xf32>
    tpu.vector_store %arg4[%c0_8, %c0_9], %18 {strides = array<i32>} : memref<8x128xf32, #tpu.memory_space<vmem>>, vector<8x128xf32>,
    %20 = vector.broadcast %14 : vector<8x1xf32> to vector<8x128xf32>
    %21 = arith.mulf %2, %20 : vector<8x128xf32>
    %c0_10 = arith.constant 0 : index
    %c0_11 = arith.constant 0 : index
    %22 = vector.load %arg5[%c0_10, %c0_11] : memref<8x128xf32, #tpu.memory_space<vmem>>, vector<8x128xf32>
    tpu.vector_store %arg5[%c0_10, %c0_11], %21 {strides = array<i32>} : memref<8x128xf32, #tpu.memory_space<vmem>>, vector<8x128xf32>,
    return
  }
  func.func @transform_0(%arg0: i32) -> (i32, i32) {
    %c0_i32 = arith.constant 0 : i32
    %c0_i32_0 = arith.constant 0 : i32
    return %arg0, %c0_i32 : i32, i32
  }
  func.func @transform_1(%arg0: i32) -> (i32, i32) {
    %c0_i32 = arith.constant 0 : i32
    %c0_i32_0 = arith.constant 0 : i32
    return %arg0, %c0_i32 : i32, i32
  }
  func.func @transform_2(%arg0: i32) -> (i32, i32) {
    %c0_i32 = arith.constant 0 : i32
    %c0_i32_0 = arith.constant 0 : i32
    %c0_i32_1 = arith.constant 0 : i32
    return %c0_i32, %c0_i32_0 : i32, i32
  }
  func.func @transform_3(%arg0: i32) -> (i32, i32) {
    %c0_i32 = arith.constant 0 : i32
    %c0_i32_0 = arith.constant 0 : i32
    return %arg0, %c0_i32 : i32, i32
  }
  func.func @transform_4(%arg0: i32) -> (i32, i32) {
    %c0_i32 = arith.constant 0 : i32
    %c0_i32_0 = arith.constant 0 : i32
    return %arg0, %c0_i32 : i32, i32
  }
}

</mosaic_0001>

<bundles_post_ra>
// kernel: tpu_custom_call.1
= control target key start
LH: loop header
LB: loop body
LE: loop exit
PB: predicated region body
PF: predicated region fallthrough
CT: control target
= control target key end

     0   :  { %11 = vsyncpa [#allocation4], 0  ;;  %s276_s0 = inlined_call_operand.hbm [shape: f32[8,128], index: 0, kind: input, shape index: {}]   ;;  %s277_s1 = inlined_call_operand.hbm [shape: f32[8,128], index: 1, kind: input, shape index: {}]   ;;  %s278_s2 = inlined_call_operand.<no memory space> [shape: f32[1,1], index: 2, kind: input, shape index: {}]   ;;  %s279_s3 = inlined_call_operand.hbm [shape: f32[8,128], index: 3, kind: output, shape index: {0}]   ;;  %s280_s4 = inlined_call_operand.hbm [shape: f32[8,128], index: 4, kind: output, shape index: {1}]  }
   0x1   :  { %12 = vsyncpa [#allocation7], 0 }
   0x2   :  { %13 = vsyncpa [#allocation5], 0 }
   0x3   :  { %14 = vsyncpa [#allocation10], 0  ;;  %s196_s15 = smov [#allocation3]   ;;  %s197_s17 = smov [#allocation6]  }
   0x4   :  { %s21_s16 = sshll.u32 %s196_s15, 4  ;;  %s31_s18 = sshll.u32 %s197_s17, 4  ;;  %s22_s16 = int_to_ptr.vmem [resolvable:$true] %s21_s16  ;;  %s32_s18 = int_to_ptr.vmem [resolvable:$true] %s31_s18 }
   0x5   :  { %s100_s21 = scalar_lea.hbm %s276_s0, 128 }
   0x6   :  { %p101_p0 = scmp.ne.s32.totalorder %s276_s0, %s100_s21  ;;  %p104_p1 = scmp.lt.u32.totalorder %s100_s21, %s276_s0 }
   0x8   :  { %p106_p2 = pnand %p104_p1, %p101_p0 }
   0xa   :  { %109 = shalt.err (!%p106_p2)
}
   0xb   :  { %s110_s26 = scalar_lea.vmem %s22_s16, 128  ;;  %p115_p4 = scmp.lt.s32.totalorder %s22_s16, %s22_s16 }
   0xc   :  { %p111_p3 = scmp.ne.s32.totalorder %s22_s16, %s110_s26  ;;  %p116_p5 = scmp.lt.s32.totalorder %s110_s26, %s110_s26 }
   0xe   :  { %p117_p6 = por %p116_p5, %p115_p4 }
  0x10   :  { %p118_p7 = pnand %p117_p6, %p111_p3 }
  0x12   :  { %121 = shalt.err (!%p118_p7)
}
  0x13   :  { %24 = dma.hbm_to_vmem [thread:$0]  %s276_s0, 128, %s22_s16, [#allocation4]  }
  0x14   :  { %s122_s5 = scalar_lea.hbm %s277_s1, 128 }
  0x15   :  { %p123_p8 = scmp.ne.s32.totalorder %s277_s1, %s122_s5  ;;  %p126_p9 = scmp.lt.u32.totalorder %s122_s5, %s277_s1 }
  0x17   :  { %p128_p10 = pnand %p126_p9, %p123_p8 }
  0x19   :  { %131 = shalt.err (!%p128_p10)
}
  0x1a   :  { %s132_s10 = scalar_lea.vmem %s32_s18, 128  ;;  %p137_p12 = scmp.lt.s32.totalorder %s32_s18, %s32_s18 }
  0x1b   :  { %p133_p11 = scmp.ne.s32.totalorder %s32_s18, %s132_s10  ;;  %p138_p13 = scmp.lt.s32.totalorder %s132_s10, %s132_s10 }
  0x1d   :  { %p139_p0 = por %p138_p13, %p137_p12 }
  0x1f   :  { %p140_p1 = pnand %p139_p0, %p133_p11 }
  0x21   :  { %143 = shalt.err (!%p140_p1)
}
  0x22   :  { %34 = dma.hbm_to_vmem [thread:$0]  %s277_s1, 128, %s32_s18, [#allocation7]  }
  0x23   :  { %188 = dma.done.wait [#allocation4], 128  }
  0x24   :  { %189 = vsyncadd [#allocation4], 4294967168 }
  0x25   :  { %190 = dma.done.wait [#allocation7], 128  }
  0x26   :  { %191 = vsyncadd [#allocation7], 4294967168  ;;  %v44_v0 = vld [vmem:[#allocation3] sm:$0xff]  ;;  %v45_v1 = vld [vmem:[#allocation6] sm:$0xff]  ;;  %v56_v8 = vstv %s278_s2  ;;  %s198_s1 = smov [#allocation8]   ;;  %s199_s15 = smov [#allocation9]  }
  0x27   :  { %v46_v2 = vmul.f32 %v44_v0, %v44_v0  ;;  %v51_v3 = vmul.f32 %v45_v1, %v45_v1  ;;  %s68_s14 = sshll.u32 %s198_s1, 4  ;;  %s78_s16 = sshll.u32 %s199_s15, 4  ;;  %s69_s14 = int_to_ptr.vmem [resolvable:$true] %s68_s14  ;;  %s79_s16 = int_to_ptr.vmem [resolvable:$true] %s78_s16 }
  0x28   :  { %s144_s17 = scalar_lea.vmem %s69_s14, 128  ;;  %p149_p3 = scmp.lt.s32.totalorder %s69_s14, %s69_s14 }
  0x29   :  { %47 = vadd.xlane.f32.xlu0 %v46_v2  ;;  %p145_p2 = scmp.ne.s32.totalorder %s69_s14, %s144_s17  ;;  %p150_p4 = scmp.lt.s32.totalorder %s144_s17, %s144_s17 }
  0x2b   :  { %p151_p5 = por %p150_p4, %p149_p3 }
  0x2d   :  { %52 = vadd.xlane.f32.xlu0 %v51_v3  ;;  %p152_p6 = pnand %p151_p5, %p145_p2 }
  0xb6   :  { %v48_v4 = vpop.xlane.xlu0 %47 }
  0xb7   :  { %v49_v5 = vmax.f32 %v48_v4, 1e-24 }
  0xb9   :  { %96 = vrsqrt.f32 %v49_v5 }
  0xba   :  { %v53_v6 = vpop.xlane.xlu0 %52 }
  0xbb   :  { %v54_v7 = vmax.f32 %v53_v6, 1e-24 }
  0xbd   :  { %98 = vrsqrt.f32 %v54_v7 }
  0xc3   :  { %v97_v9 = vpop.eup %96 }
  0xc4   :  { %v57_v10 = vmul.f32 %v97_v9, %v56_v8 }
  0xc6   :  { %v58_v11 = vmul.f32 %v57_v10, %v44_v0 }
  0xc7   :  { %v99_v12 = vpop.eup %98 }
  0xc8   :  { %59 = vst [vmem:[#allocation8] sm:$0xff] %v58_v11  ;;  %v60_v13 = vmul.f32 %v99_v12, %v45_v1 }
  0xc9   :  { %155 = shalt.err (!%p152_p6)
}
  0xca   :  { %s156_s19 = scalar_lea.hbm %s279_s3, 128 }
  0xcb   :  { %p157_p7 = scmp.ne.s32.totalorder %s279_s3, %s156_s19  ;;  %p160_p8 = scmp.lt.u32.totalorder %s156_s19, %s279_s3 }
  0xcd   :  { %p162_p9 = pnand %p160_p8, %p157_p7 }
  0xcf   :  { %165 = shalt.err (!%p162_p9)
}
  0xd0   :  { %71 = dma.vmem_to_hbm [thread:$0]  %s69_s14, 128, %s279_s3, [#allocation5]   ;;  %61 = vst [vmem:[#allocation9] sm:$0xff] %v60_v13 }
  0xd1   :  { %s166_s26 = scalar_lea.vmem %s79_s16, 128  ;;  %p171_p11 = scmp.lt.s32.totalorder %s79_s16, %s79_s16 }
  0xd2   :  { %p167_p10 = scmp.ne.s32.totalorder %s79_s16, %s166_s26  ;;  %p172_p12 = scmp.lt.s32.totalorder %s166_s26, %s166_s26 }
  0xd4   :  { %p173_p13 = por %p172_p12, %p171_p11 }
  0xd6   :  { %p174_p0 = pnand %p173_p13, %p167_p10 }
  0xd8   :  { %177 = shalt.err (!%p174_p0)
}
  0xd9   :  { %s178_s29 = scalar_lea.hbm %s280_s4, 128 }
  0xda   :  { %p179_p1 = scmp.ne.s32.totalorder %s280_s4, %s178_s29  ;;  %p182_p2 = scmp.lt.u32.totalorder %s178_s29, %s280_s4 }
  0xdc   :  { %p184_p3 = pnand %p182_p2, %p179_p1 }
  0xde   :  { %187 = shalt.err (!%p184_p3)
}
  0xdf   :  { %81 = dma.vmem_to_hbm [thread:$0]  %s79_s16, 128, %s280_s4, [#allocation10]  }
  0xe0   :  { %192 = dma.done.wait [#allocation5], 128  }
  0xe1   :  { %193 = vsyncadd [#allocation5], 4294967168 }
  0xe2   :  { %194 = dma.done.wait [#allocation10], 128  }
  0xe3   :  { %195 = vsyncadd [#allocation10], 4294967168 }
  0xe4   :  { %88 = vsyncpa [#allocation4], 1 }
  0xe5   :  { %89 = vsyncpa [#allocation7], 1 }
  0xe6   :  { %90 = vsyncpa [#allocation5], 1 }
  0xe7   :  { %91 = vsyncpa [#allocation10], 1 }

</bundles_post_ra>
